<compile_context>
chip_gen: v7x
topology: tpu7x:2x2x1
jax: 0.10.0
libtpu: 0.0.40
codegen_flags: <defaults>
</compile_context>

<pallas_src>
import functools
import math

import jax
import jax.numpy as jnp
from jax.experimental import pallas as pl
from jax.experimental.pallas import tpu as pltpu


def _round_up(x: int, m: int) -> int:
    return ((x + m - 1) // m) * m


def _erf_approx(x):
    # Abramowitz & Stegun 7.1.26 rational approximation (max abs err ~1.5e-7),
    # built from exp/mul/add only.
    # TODO(synk): lax.erf has no guaranteed Mosaic-TPU lowering; this keeps exact
    # (erf-based) GELU semantics to ~1e-6 without risking a lowering failure.
    a1, a2, a3, a4, a5 = (0.254829592, -0.284496736, 1.421413741,
                          -1.453152027, 1.061405429)
    p = 0.3275911
    ax = jnp.abs(x)
    t = 1.0 / (1.0 + p * ax)
    poly = ((((a5 * t + a4) * t + a3) * t + a2) * t + a1) * t
    y = 1.0 - poly * jnp.exp(-ax * ax)
    return jnp.where(x >= 0, y, -y)


# ---------------------------------------------------------------------------
# Fused kernel:  o = act(x @ W^T + b), tiled over (M, N, K)
# ---------------------------------------------------------------------------
def _ffn_kernel(x_ref, wt_ref, b_ref, o_ref, acc_ref, *, act):
    k = pl.program_id(2)

    @pl.when(k == 0)
    def _():
        acc_ref[...] = jnp.zeros_like(acc_ref)

    # MXU operands in native dtype, f32 accumulation.
    acc_ref[...] += jnp.dot(x_ref[...], wt_ref[...],
                            preferred_element_type=jnp.float32)

    @pl.when(k == pl.num_programs(2) - 1)
    def _():
        y = acc_ref[...] + b_ref[...].astype(jnp.float32)
        if act == "gelu":
            y = y * 0.5 * (1.0 + _erf_approx(y * (1.0 / math.sqrt(2.0))))
        elif act == "relu":
            y = jnp.maximum(y, 0.0)
        o_ref[...] = y.astype(o_ref.dtype)


def ffn_linear_act(x2d, wt, b2d, *, tm, tn, tk, act):
    """x2d: (Rp, Hp), wt: (Hp, Op), b2d: (1, Op) -> (Rp, Op). All dims tile-multiples."""
    Rp, Hp = x2d.shape
    Op = wt.shape[1]
    grid = (Rp // tm, Op // tn, Hp // tk)
    return pl.pallas_call(
        functools.partial(_ffn_kernel, act=act),
        out_shape=jax.ShapeDtypeStruct((Rp, Op), x2d.dtype),
        grid_spec=pltpu.PrefetchScalarGridSpec(
            num_scalar_prefetch=0,
            grid=grid,
            in_specs=[
                pl.BlockSpec((tm, tk), lambda i, j, k: (i, k)),
                pl.BlockSpec((tk, tn), lambda i, j, k: (k, j)),
                pl.BlockSpec((1, tn), lambda i, j, k: (0, j)),
            ],
            out_specs=pl.BlockSpec((tm, tn), lambda i, j, k: (i, j)),
            scratch_shapes=[pltpu.VMEM((tm, tn), jnp.float32)],
        ),
        compiler_params=pltpu.CompilerParams(
            dimension_semantics=("parallel", "parallel", "arbitrary"),
            vmem_limit_bytes=32 * 1024 * 1024,  # safe on v5e/v6e/v7x with these tiles
        ),
    )(x2d, wt, b2d)


# ---------------------------------------------------------------------------
# Module-level wrapper mirroring PositionwiseFeedForward.forward
# ---------------------------------------------------------------------------
class PositionwiseFeedForwardPallas:
    # Tile targets: tm<=256 rows, tn<=256 output cols, tk<=512 reduction.
    # ~3 MiB of VMEM double-buffered -> fits every generation (incl. v7x 64 MiB).
    def __init__(self, hidden_dim, intermediate_dim, hidden_act="gelu",
                 key=None, dtype=jnp.float32):
        self.hidden_dim = hidden_dim
        self.intermediate_dim = intermediate_dim
        self.hidden_act = hidden_act

        key = jax.random.PRNGKey(0) if key is None else key
        kw, kb = jax.random.split(key)
        bound = 1.0 / math.sqrt(hidden_dim)  # PyTorch default Linear init range
        self.W = jax.random.uniform(kw, (intermediate_dim, hidden_dim), dtype, -bound, bound)
        self.b = jax.random.uniform(kb, (intermediate_dim,), dtype, -bound, bound)

        # Tile sizes (lane/sublane aligned).
        self.tk = min(512, _round_up(hidden_dim, 128))
        self.tn = min(256, _round_up(intermediate_dim, 128))
        self._Hp = _round_up(hidden_dim, self.tk)
        self._Op = _round_up(intermediate_dim, self.tn)

        # Hoisted weight prep (once, not per forward): transpose + pad + (1, O) bias.
        wt = jnp.transpose(self.W)  # (H, O)
        self.Wt_p = jnp.pad(
            wt, ((0, self._Hp - hidden_dim), (0, self._Op - intermediate_dim)))
        self.b_p = jnp.pad(
            self.b, (0, self._Op - intermediate_dim)).reshape(1, self._Op)

    def __call__(self, hidden_states):
        lead = hidden_states.shape[:-1]
        H = hidden_states.shape[-1]
        assert H == self.hidden_dim
        x2d = hidden_states.reshape(-1, H)
        R = x2d.shape[0]

        tm = min(256, _round_up(R, 8))
        Rp = _round_up(R, tm)
        if Rp != R or self._Hp != H:
            x2d = jnp.pad(x2d, ((0, Rp - R), (0, self._Hp - H)))

        y = ffn_linear_act(x2d, self.Wt_p, self.b_p,
                           tm=tm, tn=self.tn, tk=self.tk, act=self.hidden_act)
        y = y[:R, :self.intermediate_dim]
        return y.reshape(*lead, self.intermediate_dim)


# ---------------------------------------------------------------------------
# Pure-JAX reference (exact erf-based GELU, matching the PyTorch module)
# ---------------------------------------------------------------------------
def reference_forward(mod, hidden_states):
    y = hidden_states @ mod.W.T + mod.b
    if mod.hidden_act == "gelu":
        return y * 0.5 * (1.0 + jax.lax.erf(y / math.sqrt(2.0)))
    return jnp.maximum(y, 0.0)


if __name__ == "__main__":
    B, S, hidden, intermediate = 2, 8, 32, 128
    key = jax.random.PRNGKey(0)
    kx, kp = jax.random.split(key)

    x = jax.random.normal(kx, (B, S, hidden), jnp.float32)
    mod = PositionwiseFeedForwardPallas(hidden, intermediate, "gelu", key=kp)

    out = jax.block_until_ready(mod(x))
    ref = reference_forward(mod, x)

    assert out.shape == (B, S, intermediate)
    assert jnp.allclose(out, ref, atol=1e-4, rtol=1e-4), "mismatch vs reference"

    print("KERNEL_OK")
</pallas_src>

<mosaic_0001>
module attributes {stable_mosaic.version = 11 : i64} {
  func.func @_ffn_kernel(%arg0: i32, %arg1: i32, %arg2: i32, %arg3: memref<16x128xf32, #tpu.memory_space<vmem>>, %arg4: memref<128x128xf32, #tpu.memory_space<vmem>>, %arg5: memref<1x128xf32, #tpu.memory_space<vmem>>, %arg6: memref<16x128xf32, #tpu.memory_space<vmem>>, %arg7: memref<16x128xf32, #tpu.memory_space<vmem>>) attributes {dimension_semantics = [#tpu.dimension_semantics<parallel>, #tpu.dimension_semantics<parallel>, #tpu.dimension_semantics<arbitrary>], iteration_bounds = array<i64: 1, 1, 1>, scalar_prefetch = 0 : i64, scratch_operands = 1 : i64, tpu.core_type = #tpu.core_type<tc>, window_params = [{transform_indices = @transform_0, window_bounds = array<i64: 16, 128>}, {transform_indices = @transform_1, window_bounds = array<i64: 128, 128>}, {transform_indices = @transform_2, window_bounds = array<i64: 1, 128>}, {transform_indices = @transform_3, window_bounds = array<i64: 16, 128>}]} {
    %c0_i32 = arith.constant 0 : i32
    %0 = arith.cmpi eq, %arg2, %c0_i32 : i32
    %1 = arith.extui %0 : i1 to i32
    %c0_i32_0 = arith.constant 0 : i32
    %2 = arith.cmpi ne, %1, %c0_i32_0 : i32
    scf.if %2 {
      %cst_10 = arith.constant 0.000000e+00 : f32
      %12 = vector.broadcast %cst_10 : f32 to vector<16x128xf32>
      %c0_11 = arith.constant 0 : index
      %c0_12 = arith.constant 0 : index
      %13 = vector.load %arg7[%c0_11, %c0_12] : memref<16x128xf32, #tpu.memory_space<vmem>>, vector<16x128xf32>
      tpu.vector_store %arg7[%c0_11, %c0_12], %12 {strides = array<i32>} : memref<16x128xf32, #tpu.memory_space<vmem>>, vector<16x128xf32>,
    } else {
    }
    %c0 = arith.constant 0 : index
    %c0_1 = arith.constant 0 : index
    %3 = vector.load %arg7[%c0, %c0_1] : memref<16x128xf32, #tpu.memory_space<vmem>>, vector<16x128xf32>
    %c0_2 = arith.constant 0 : index
    %c0_3 = arith.constant 0 : index
    %4 = vector.load %arg3[%c0_2, %c0_3] : memref<16x128xf32, #tpu.memory_space<vmem>>, vector<16x128xf32>
    %c0_4 = arith.constant 0 : index
    %c0_5 = arith.constant 0 : index
    %5 = vector.load %arg4[%c0_4, %c0_5] : memref<128x128xf32, #tpu.memory_space<vmem>>, vector<128x128xf32>
    %cst = arith.constant dense<0.000000e+00> : vector<16x128xf32>
    %6 = tpu.matmul %4, %5, %cst {dimension_numbers = #tpu.dot_dimension_numbers<[1], [0], [0], [1], [0, 0, 1, 1], [], []>} : vector<16x128xf32>, vector<128x128xf32>, vector<16x128xf32> -> vector<16x128xf32>
    %7 = arith.addf %3, %6 : vector<16x128xf32>
    %c0_6 = arith.constant 0 : index
    %c0_7 = arith.constant 0 : index
    %8 = vector.load %arg7[%c0_6, %c0_7] : memref<16x128xf32, #tpu.memory_space<vmem>>, vector<16x128xf32>
    tpu.vector_store %arg7[%c0_6, %c0_7], %7 {strides = array<i32>} : memref<16x128xf32, #tpu.memory_space<vmem>>, vector<16x128xf32>,
    %c0_i32_8 = arith.constant 0 : i32
    %9 = arith.cmpi eq, %arg2, %c0_i32_8 : i32
    %10 = arith.extui %9 : i1 to i32
    %c0_i32_9 = arith.constant 0 : i32
    %11 = arith.cmpi ne, %10, %c0_i32_9 : i32
    scf.if %11 {
      %c0_10 = arith.constant 0 : index
      %c0_11 = arith.constant 0 : index
      %12 = vector.load %arg7[%c0_10, %c0_11] : memref<16x128xf32, #tpu.memory_space<vmem>>, vector<16x128xf32>
      %c0_12 = arith.constant 0 : index
      %c0_13 = arith.constant 0 : index
      %13 = vector.load %arg5[%c0_12, %c0_13] : memref<1x128xf32, #tpu.memory_space<vmem>>, vector<1x128xf32>
      %14 = vector.broadcast %13 : vector<1x128xf32> to vector<16x128xf32>
      %15 = arith.addf %12, %14 : vector<16x128xf32>
      %cst_14 = arith.constant 5.000000e-01 : f32
      %16 = vector.broadcast %cst_14 : f32 to vector<16x128xf32>
      %17 = arith.mulf %15, %16 : vector<16x128xf32>
      %cst_15 = arith.constant 0.707106769 : f32
      %18 = vector.broadcast %cst_15 : f32 to vector<16x128xf32>
      %19 = arith.mulf %15, %18 : vector<16x128xf32>
      %20 = math.absf %19 : vector<16x128xf32>
      %cst_16 = arith.constant 0.327591091 : f32
      %21 = vector.broadcast %cst_16 : f32 to vector<16x128xf32>
      %22 = arith.mulf %21, %20 : vector<16x128xf32>
      %cst_17 = arith.constant 1.000000e+00 : f32
      %23 = vector.broadcast %cst_17 : f32 to vector<16x128xf32>
      %24 = arith.addf %23, %22 : vector<16x128xf32>
      %cst_18 = arith.constant 1.000000e+00 : f32
      %25 = vector.broadcast %cst_18 : f32 to vector<16x128xf32>
      %26 = arith.divf %25, %24 : vector<16x128xf32>
      %cst_19 = arith.constant 1.06140542 : f32
      %27 = vector.broadcast %cst_19 : f32 to vector<16x128xf32>
      %28 = arith.mulf %27, %26 : vector<16x128xf32>
      %cst_20 = arith.constant -1.45315206 : f32
      %29 = vector.broadcast %cst_20 : f32 to vector<16x128xf32>
      %30 = arith.addf %28, %29 : vector<16x128xf32>
      %31 = arith.mulf %30, %26 : vector<16x128xf32>
      %cst_21 = arith.constant 1.42141378 : f32
      %32 = vector.broadcast %cst_21 : f32 to vector<16x128xf32>
      %33 = arith.addf %31, %32 : vector<16x128xf32>
      %34 = arith.mulf %33, %26 : vector<16x128xf32>
      %cst_22 = arith.constant -0.284496725 : f32
      %35 = vector.broadcast %cst_22 : f32 to vector<16x128xf32>
      %36 = arith.addf %34, %35 : vector<16x128xf32>
      %37 = arith.mulf %36, %26 : vector<16x128xf32>
      %cst_23 = arith.constant 0.254829586 : f32
      %38 = vector.broadcast %cst_23 : f32 to vector<16x128xf32>
      %39 = arith.addf %37, %38 : vector<16x128xf32>
      %40 = arith.mulf %39, %26 : vector<16x128xf32>
      %cst_24 = arith.constant 0.000000e+00 : f32
      %41 = vector.broadcast %cst_24 : f32 to vector<16x128xf32>
      %42 = arith.subf %41, %20 : vector<16x128xf32>
      %43 = arith.mulf %42, %20 : vector<16x128xf32>
      %44 = math.exp %43 : vector<16x128xf32>
      %45 = arith.mulf %40, %44 : vector<16x128xf32>
      %cst_25 = arith.constant 1.000000e+00 : f32
      %46 = vector.broadcast %cst_25 : f32 to vector<16x128xf32>
      %47 = arith.subf %46, %45 : vector<16x128xf32>
      %cst_26 = arith.constant 0.000000e+00 : f32
      %48 = vector.broadcast %cst_26 : f32 to vector<16x128xf32>
      %49 = arith.cmpf oge, %19, %48 : vector<16x128xf32>
      %cst_27 = arith.constant 0.000000e+00 : f32
      %50 = vector.broadcast %cst_27 : f32 to vector<16x128xf32>
      %51 = arith.subf %50, %47 : vector<16x128xf32>
      %52 = arith.select %49, %47, %51 : vector<16x128xi1>, vector<16x128xf32>
      %cst_28 = arith.constant 1.000000e+00 : f32
      %53 = vector.broadcast %cst_28 : f32 to vector<16x128xf32>
      %54 = arith.addf %53, %52 : vector<16x128xf32>
      %55 = arith.mulf %17, %54 : vector<16x128xf32>
      %c0_29 = arith.constant 0 : index
      %c0_30 = arith.constant 0 : index
      %56 = vector.load %arg6[%c0_29, %c0_30] : memref<16x128xf32, #tpu.memory_space<vmem>>, vector<16x128xf32>
      tpu.vector_store %arg6[%c0_29, %c0_30], %55 {strides = array<i32>} : memref<16x128xf32, #tpu.memory_space<vmem>>, vector<16x128xf32>,
    } else {
    }
    return
  }
  func.func @transform_0(%arg0: i32, %arg1: i32, %arg2: i32) -> (i32, i32) {
    %c0_i32 = arith.constant 0 : i32
    return %arg0, %arg2 : i32, i32
  }
  func.func @transform_1(%arg0: i32, %arg1: i32, %arg2: i32) -> (i32, i32) {
    %c0_i32 = arith.constant 0 : i32
    return %arg2, %arg1 : i32, i32
  }
  func.func @transform_2(%arg0: i32, %arg1: i32, %arg2: i32) -> (i32, i32) {
    %c0_i32 = arith.constant 0 : i32
    %c0_i32_0 = arith.constant 0 : i32
    return %c0_i32, %arg1 : i32, i32
  }
  func.func @transform_3(%arg0: i32, %arg1: i32, %arg2: i32) -> (i32, i32) {
    %c0_i32 = arith.constant 0 : i32
    return %arg0, %arg1 : i32, i32
  }
}

</mosaic_0001>

<bundles_post_ra>
// kernel: tpu_custom_call.1
= control target key start
LH: loop header
LB: loop body
LE: loop exit
PB: predicated region body
PF: predicated region fallthrough
CT: control target
= control target key end

     0   :  { %8 = vsyncpa [#allocation4], 0  ;;  %s480_s0 = inlined_call_operand.hbm [shape: f32[16,128], index: 0, kind: input, shape index: {}]   ;;  %s481_s1 = inlined_call_operand.hbm [shape: f32[128,128], index: 1, kind: input, shape index: {}]   ;;  %s482_s2 = inlined_call_operand.vmem [shape: f32[1,128], index: 2, kind: input, shape index: {}]   ;;  %s483_s3 = inlined_call_operand.hbm [shape: f32[16,128], index: 3, kind: output, shape index: {}]  }
   0x1   :  { %9 = vsyncpa [#allocation7], 0 }
   0x2   :  { %10 = vsyncpa [#allocation5], 0  ;;  %s407_s12 = smov [#allocation3]   ;;  %s335_s16 = scalar_lea.hbm %s480_s0, 256 }
   0x3   :  { %s16_s13 = sshll.u32 %s407_s12, 4  ;;  %p336_p0 = scmp.ne.s32.totalorder %s480_s0, %s335_s16  ;;  %s17_s13 = int_to_ptr.vmem [resolvable:$true] %s16_s13 }
   0x4   :  { %p339_p1 = scmp.lt.u32.totalorder %s335_s16, %s480_s0 }
   0x6   :  { %p341_p2 = pnand %p339_p1, %p336_p0 }
   0x8   :  { %344 = shalt.err (!%p341_p2)
}
   0x9   :  { %s345_s21 = scalar_lea.vmem %s17_s13, 256  ;;  %p350_p4 = scmp.lt.s32.totalorder %s17_s13, %s17_s13 }
   0xa   :  { %p346_p3 = scmp.ne.s32.totalorder %s17_s13, %s345_s21  ;;  %p351_p5 = scmp.lt.s32.totalorder %s345_s21, %s345_s21 }
   0xc   :  { %p352_p6 = por %p351_p5, %p350_p4 }
   0xe   :  { %p353_p7 = pnand %p352_p6, %p346_p3 }
  0x10   :  { %356 = shalt.err (!%p353_p7)
}
  0x11   :  { %s408_s22 = smov 128   ;;  %s409_s23 = smov 8  }
  0x12   :  { %22 = dma.hbm_to_vmem [thread:$0]  %s480_s0, 256, %s17_s13, [#allocation4], %s408_s22, %s408_s22, %s409_s23  }
  0x13   :  { %s410_s26 = smov [#allocation6]   ;;  %s357_s30 = scalar_lea.hbm %s481_s1, 2048 }
  0x14   :  { %s28_s27 = sshll.u32 %s410_s26, 4  ;;  %p358_p8 = scmp.ne.s32.totalorder %s481_s1, %s357_s30  ;;  %s29_s27 = int_to_ptr.vmem [resolvable:$true] %s28_s27 }
  0x15   :  { %p361_p9 = scmp.lt.u32.totalorder %s357_s30, %s481_s1 }
  0x17   :  { %p363_p10 = pnand %p361_p9, %p358_p8 }
  0x19   :  { %366 = shalt.err (!%p363_p10)
}
  0x1a   :  { %s367_s8 = scalar_lea.vmem %s29_s27, 2048  ;;  %p372_p12 = scmp.lt.s32.totalorder %s29_s27, %s29_s27 }
  0x1b   :  { %p368_p11 = scmp.ne.s32.totalorder %s29_s27, %s367_s8  ;;  %p373_p13 = scmp.lt.s32.totalorder %s367_s8, %s367_s8 }
  0x1d   :  { %p374_p0 = por %p373_p13, %p372_p12 }
  0x1f   :  { %p375_p1 = pnand %p374_p0, %p368_p11 }
  0x21   :  { %378 = shalt.err (!%p375_p1)
}
  0x22   :  { %34 = dma.hbm_to_vmem [thread:$0]  %s481_s1, 2048, %s29_s27, [#allocation7], %s408_s22, %s408_s22, %s409_s23  }
  0x23   :  { %401 = dma.done.wait [#allocation4], 256  }
  0x24   :  { %402 = vsyncadd [#allocation4], 4294967040 }
  0x25   :  { %403 = dma.done.wait [#allocation7], 2048  }
  0x26   :  { %404 = vsyncadd [#allocation7], 4294965248  ;;  %v53_v0 = vld [vmem:[#allocation6] sm:$0xff]  ;;  %v54_v1 = vld [vmem:[#allocation6 + $0x8] sm:$0xff] }
  0x27   :  { %v55_v2 = vld [vmem:[#allocation6 + $0x10] sm:$0xff]  ;;  %v290_v3 = vpack.c.bf16 %v54_v1, %v53_v0  ;;  %v56_v4 = vld [vmem:[#allocation6 + $0x18] sm:$0xff]  ;;  %v57_v6 = vld [vmem:[#allocation6 + $0x20] sm:$0xff] }
  0x28   :  { %v294_v5 = vpack.c.bf16 %v56_v4, %v55_v2  ;;  %v58_v7 = vld [vmem:[#allocation6 + $0x28] sm:$0xff]  ;;  %v51_v9 = vld [vmem:[#allocation3] sm:$0xff]  ;;  %v60_v11 = vld [vmem:[#allocation6 + $0x38] sm:$0xff] }
  0x29   :  { %291 = vmatprep.subr.bf16.mxu0 %v290_v3  ;;  %v298_v8 = vpack.c.bf16 %v58_v7, %v57_v6  ;;  %v59_v10 = vld [vmem:[#allocation6 + $0x30] sm:$0xff]  ;;  %287 = vmatprep.mubr.f32.mxu0 %v51_v9  ;;  %v61_v13 = vld [vmem:[#allocation6 + $0x40] sm:$0xff]  ;;  %v62_v14 = vld [vmem:[#allocation6 + $0x48] sm:$0xff] }
  0x2a   :  { %293 = vmatpush3.bf16.msra.mxu0 %v290_v3  ;;  %v302_v12 = vpack.c.bf16 %v60_v11, %v59_v10  ;;  %v306_v15 = vpack.c.bf16 %v62_v14, %v61_v13  ;;  %v63_v16 = vld [vmem:[#allocation6 + $0x50] sm:$0xff]  ;;  %v64_v17 = vld [vmem:[#allocation6 + $0x58] sm:$0xff]  ;;  %v65_v19 = vld [vmem:[#allocation6 + $0x60] sm:$0xff] }
  0x2b   :  { %295 = vmatprep.subr.bf16.mxu0 %v294_v5  ;;  %v310_v18 = vpack.c.bf16 %v64_v17, %v63_v16  ;;  %v66_v20 = vld [vmem:[#allocation6 + $0x68] sm:$0xff]  ;;  %v67_v22 = vld [vmem:[#allocation6 + $0x70] sm:$0xff]  ;;  %v68_v23 = vld [vmem:[#allocation6 + $0x78] sm:$0xff] }
  0x2c   :  { %v314_v21 = vpack.c.bf16 %v66_v20, %v65_v19  ;;  %v318_v24 = vpack.c.bf16 %v68_v23, %v67_v22  ;;  %v52_v25 = vld [vmem:[#allocation3 + $0x8] sm:$0xff]  ;;  %v236_v26 = vld [vmem:[%s482_s2] ss:$0 sm:$0xff]  ;;  %s411_s2 = smov [#allocation8]  }
  0x2d   :  { %s223_s11 = sshll.u32 %s411_s2, 4  ;;  %s224_s11 = int_to_ptr.vmem [resolvable:$true] %s223_s11 }
  0x2e   :  { %297 = vmatpush3.bf16.msra.mxu0 %v294_v5  ;;  %s379_s12 = scalar_lea.vmem %s224_s11, 256  ;;  %p384_p3 = scmp.lt.s32.totalorder %s224_s11, %s224_s11 }
  0x2f   :  { %299 = vmatprep.subr.bf16.mxu0 %v298_v8  ;;  %p380_p2 = scmp.ne.s32.totalorder %s224_s11, %s379_s12  ;;  %p385_p4 = scmp.lt.s32.totalorder %s379_s12, %s379_s12 }
  0x31   :  { %p386_p5 = por %p385_p4, %p384_p3 }
  0x32   :  { %301 = vmatpush3.bf16.msra.mxu0 %v298_v8 }
  0x33   :  { %303 = vmatprep.subr.bf16.mxu0 %v302_v12  ;;  %p387_p6 = pnand %p386_p5, %p380_p2 }
  0x36   :  { %305 = vmatpush3.bf16.msra.mxu0 %v302_v12 }
  0x37   :  { %307 = vmatprep.subr.bf16.mxu0 %v306_v15 }
  0x3a   :  { %309 = vmatpush3.bf16.msra.mxu0 %v306_v15 }
  0x3b   :  { %311 = vmatprep.subr.bf16.mxu0 %v310_v18 }
  0x3e   :  { %313 = vmatpush3.bf16.msra.mxu0 %v310_v18 }
  0x3f   :  { %315 = vmatprep.subr.bf16.mxu0 %v314_v21 }
  0x42   :  { %317 = vmatpush3.bf16.msra.mxu0 %v314_v21 }
  0x43   :  { %319 = vmatprep.subr.bf16.mxu0 %v318_v24 }
  0x46   :  { %321 = vmatpush3.bf16.msra.mxu0 %v318_v24 }
  0x49   :  { %288 = vmatmul.mubr.f32.vlgmr.msra.gmra.mrb[0].mxu0 %v52_v25 }
 0x11c   :  { %v289_v27 = vpop.f32.mrb[0].mxu0 }
 0x11d   :  { %v161_v28 = vadd.f32 %v289_v27, %v236_v26  ;;  %v135_v29 = vpop.f32.mrb[1].mxu0 }
 0x11e   :  { %v160_v30 = vadd.f32 %v236_v26, %v135_v29 }
 0x11f   :  { %v165_v31 = vmul.f32 0.70710677, %v161_v28  ;;  %v163_v10 = vmul.f32 0.5, %v161_v28 }
 0x120   :  { %v164_v32 = vmul.f32 0.70710677, %v160_v30  ;;  %v162_v13 = vmul.f32 0.5, %v160_v30 }
 0x121   :  { %v167_v33 = vand.u32 2147483647, %v165_v31  ;;  %vm207_vm0 = vcmp.ge.f32.partialorder %v165_v31, 0.0 }
 0x122   :  { %v166_v34 = vand.u32 2147483647, %v164_v32  ;;  %vm206_vm1 = vcmp.ge.f32.partialorder %v164_v32, 0.0 }
 0x123   :  { %v169_v35 = vmul.f32 0.3275911, %v167_v33  ;;  %v195_v39 = vsub.f32 0.0, %v167_v33 }
 0x124   :  { %v168_v36 = vmul.f32 0.3275911, %v166_v34  ;;  %v194_v40 = vsub.f32 0.0, %v166_v34 }
 0x125   :  { %v171_v37 = vadd.f32 1.0, %v169_v35  ;;  %v197_v42 = vmul.f32 %v195_v39, %v167_v33 }
 0x126   :  { %v170_v38 = vadd.f32 1.0, %v168_v36  ;;  %v196_v45 = vmul.f32 %v194_v40, %v166_v34 }
 0x127   :  { %327 = vrcp.f32 %v171_v37  ;;  %v200_v48 = vmul.f32 1.442695, %v197_v42 }
 0x128   :  { %329 = vrcp.f32 %v170_v38  ;;  %v198_v51 = vmul.f32 1.442695, %v196_v45 }
 0x129   :  { %331 = vpow2.f32 %v200_v48 }
 0x12a   :  { %333 = vpow2.f32 %v198_v51 }
 0x131   :  { %v328_v41 = vpop.eup %327 }
 0x132   :  { %v330_v43 = vpop.eup %329  ;;  %v177_v44 = vmul.f32 1.0614054, %v328_v41 }
 0x133   :  { %v176_v46 = vmul.f32 1.0614054, %v330_v43  ;;  %v332_v0 = vpop.eup %331 }
 0x134   :  { %v179_v47 = vadd.f32 -1.4531521, %v177_v44  ;;  %v334_v2 = vpop.eup %333 }
 0x135   :  { %v178_v49 = vadd.f32 -1.4531521, %v176_v46 }
 0x136   :  { %v181_v50 = vmul.f32 %v328_v41, %v179_v47 }
 0x137   :  { %v180_v52 = vmul.f32 %v330_v43, %v178_v49 }
 0x138   :  { %v183_v53 = vadd.f32 1.4214138, %v181_v50 }
 0x139   :  { %v182_v54 = vadd.f32 1.4214138, %v180_v52 }
 0x13a   :  { %v185_v55 = vmul.f32 %v328_v41, %v183_v53 }
 0x13b   :  { %v184_v56 = vmul.f32 %v330_v43, %v182_v54 }
 0x13c   :  { %v187_v57 = vadd.f32 -0.28449672, %v185_v55 }
 0x13d   :  { %v186_v58 = vadd.f32 -0.28449672, %v184_v56 }
 0x13e   :  { %v189_v59 = vmul.f32 %v328_v41, %v187_v57 }
 0x13f   :  { %v188_v60 = vmul.f32 %v330_v43, %v186_v58 }
 0x140   :  { %v191_v61 = vadd.f32 0.2548296, %v189_v59 }
 0x141   :  { %v190_v62 = vadd.f32 0.2548296, %v188_v60 }
 0x142   :  { %v193_v63 = vmul.f32 %v328_v41, %v191_v61 }
 0x143   :  { %v192_v1 = vmul.f32 %v330_v43, %v190_v62 }
 0x144   :  { %v203_v3 = vmul.f32 %v332_v0, %v193_v63 }
 0x145   :  { %v202_v4 = vmul.f32 %v334_v2, %v192_v1 }
 0x146   :  { %v205_v5 = vsub.f32 1.0, %v203_v3 }
 0x147   :  { %v204_v6 = vsub.f32 1.0, %v202_v4 }
 0x148   :  { %v209_v7 = vsub.f32 0.0, %v205_v5 }
 0x149   :  { %v208_v8 = vsub.f32 0.0, %v204_v6 }
 0x14a   :  { %v211_v9 = vsel %vm207_vm0, %v205_v5, %v209_v7 }
 0x14b   :  { %v213_v11 = vadd.f32 1.0, %v211_v9  ;;  %v210_v12 = vsel %vm206_vm1, %v204_v6, %v208_v8 }
 0x14c   :  { %v212_v14 = vadd.f32 1.0, %v210_v12 }
 0x14d   :  { %v215_v15 = vmul.f32 %v213_v11, %v163_v10 }
 0x14e   :  { %v214_v16 = vmul.f32 %v212_v14, %v162_v13 }
 0x14f   :  { %217 = vst [vmem:[#allocation8 + $0x8] sm:$0xff] %v215_v15 }
 0x150   :  { %216 = vst [vmem:[#allocation8] sm:$0xff] %v214_v16 }
 0x151   :  { %390 = shalt.err (!%p387_p6)
}
 0x152   :  { %s391_s15 = scalar_lea.hbm %s483_s3, 256 }
 0x153   :  { %p392_p7 = scmp.ne.s32.totalorder %s483_s3, %s391_s15  ;;  %p395_p8 = scmp.lt.u32.totalorder %s391_s15, %s483_s3 }
 0x155   :  { %p397_p9 = pnand %p395_p8, %p392_p7 }
 0x157   :  { %400 = shalt.err (!%p397_p9)
}
 0x158   :  { %229 = dma.vmem_to_hbm [thread:$0]  %s224_s11, 256, %s483_s3, [#allocation5], %s408_s22, %s408_s22, %s409_s23  }
 0x159   :  { %405 = dma.done.wait [#allocation5], 256  }
 0x15a   :  { %406 = vsyncadd [#allocation5], 4294967040 }
 0x15b   :  { %233 = vsyncpa [#allocation4], 1 }
 0x15c   :  { %234 = vsyncpa [#allocation7], 1 }
 0x15d   :  { %235 = vsyncpa [#allocation5], 1 }

</bundles_post_ra>
